<compile_context>
chip_gen: v7x
topology: tpu7x:2x2x1
jax: 0.10.0
libtpu: 0.0.40
codegen_flags: <defaults>
</compile_context>

<pallas_src>
import functools

import jax
import jax.numpy as jnp
from jax.experimental import pallas as pl
from jax.experimental.pallas import tpu as pltpu


# --------------------------------------------------------------------------
# Kernels
# --------------------------------------------------------------------------
def _fused_kernel(x_ref, w1_ref, b1_ref, w2_ref, b2_ref, out_ref, y_ref,
                  *, inv_hw):
    """Single-pass: pooled mean + MLP + sigmoid + scale on a resident slab.

    x_ref:  (1, C, HW)   one batch element
    w1_ref: (Cr, C)  b1_ref: (Cr, 1)  w2_ref: (C, Cr)  b2_ref: (C, 1)  (f32)
    out_ref:(1, C, HW)   y_ref: (1, C, 1)
    """
    x = x_ref[0]                                                 # (C, HW)
    pooled = jnp.sum(x.astype(jnp.float32), axis=-1, keepdims=True) * inv_hw
    h = jnp.dot(w1_ref[...], pooled,
                preferred_element_type=jnp.float32) + b1_ref[...]
    h = jnp.maximum(h, 0.0)                                      # (Cr, 1)
    s = jnp.dot(w2_ref[...], h,
                preferred_element_type=jnp.float32) + b2_ref[...]
    s = jax.nn.sigmoid(s)                                        # (C, 1)
    y_ref[0] = s.astype(y_ref.dtype)
    out_ref[0] = x * s.astype(x.dtype)


def _pool_sum_kernel(x_ref, sums_ref, acc_ref, *, hw_tile, hw_total,
                     needs_mask):
    """Phase 1: accumulate per-channel spatial sums over HW tiles.

    x_ref:   (1, c_tile, hw_tile)
    sums_ref:(1, c_tile, 1) f32   (resident across the HW-tile axis)
    acc_ref: (c_tile, 1)    f32 scratch
    """
    t = pl.program_id(2)

    @pl.when(t == 0)
    def _():
        acc_ref[...] = jnp.zeros_like(acc_ref)

    xt = x_ref[0].astype(jnp.float32)                            # (c_tile, hw_tile)
    if needs_mask:
        # Boundary input blocks are NOT guaranteed zero: mask lanes >= HW.
        idx = jax.lax.broadcasted_iota(jnp.int32, xt.shape, 1) + t * hw_tile
        xt = jnp.where(idx < hw_total, xt, 0.0)
    acc_ref[...] += jnp.sum(xt, axis=-1, keepdims=True)

    @pl.when(t == pl.num_programs(2) - 1)
    def _():
        sums_ref[0] = acc_ref[...]


def _scale_kernel(x_ref, y_ref, out_ref):
    """Phase 2: pure streaming broadcast-multiply in the native dtype."""
    out_ref[0] = x_ref[0] * y_ref[0]                             # (c,hw)*(c,1)


# --------------------------------------------------------------------------
# Wrapper
# --------------------------------------------------------------------------
def _vmem_capacity_bytes():
    try:
        info = pltpu.get_tpu_info()
        cap = getattr(info, "vmem_capacity_bytes", None)
        if cap:
            return int(cap)
    except Exception:
        pass
    return 64 * 1024 * 1024      # conservative (v7x per-TC) fallback


def _clamp(v, lo, hi):
    return int(min(max(v, lo), hi))


def ca_layer(x, w1, b1, w2, b2, *, force_two_phase=False,
             _max_hw_tile=None, _max_c_tile=None):
    """x: (N, C, H, W). Returns (x * y, y) with y: (N, C, 1, 1)."""
    N, C, H, W = x.shape
    Cr = w1.shape[0]
    HW = H * W
    itemsize = jnp.dtype(x.dtype).itemsize

    vmem_cap = _vmem_capacity_bytes()
    vmem_usable = (vmem_cap * 3) // 4        # ~48 MiB on v7x, ~96 MiB on v5e/v6e

    x_flat = x.reshape(N, C, HW)             # free: last-two-dims reshape
    w1f = w1.astype(jnp.float32)
    w2f = w2.astype(jnp.float32)
    b1f = b1.astype(jnp.float32)
    b2f = b2.astype(jnp.float32)
    w_bytes = 4 * (w1.size + b1.size + w2.size + b2.size)

    # ---------------- fused single-pass path ----------------
    slab_bytes = C * HW * itemsize
    fused_fits = 4 * slab_bytes + w_bytes + (4 << 20) <= vmem_usable

    if fused_fits and not force_two_phase:
        vmem_limit = _clamp(4 * slab_bytes + w_bytes + (8 << 20),
                            16 << 20, vmem_usable)
        out_flat, y3 = pl.pallas_call(
            functools.partial(_fused_kernel, inv_hw=1.0 / HW),
            out_shape=(jax.ShapeDtypeStruct((N, C, HW), x.dtype),
                       jax.ShapeDtypeStruct((N, C, 1), x.dtype)),
            grid_spec=pltpu.PrefetchScalarGridSpec(
                num_scalar_prefetch=0,
                grid=(N,),
                in_specs=[
                    pl.BlockSpec((1, C, HW), lambda n: (n, 0, 0)),   # x
                    pl.BlockSpec((Cr, C), lambda n: (0, 0)),         # w1
                    pl.BlockSpec((Cr, 1), lambda n: (0, 0)),         # b1
                    pl.BlockSpec((C, Cr), lambda n: (0, 0)),         # w2
                    pl.BlockSpec((C, 1), lambda n: (0, 0)),          # b2
                ],
                out_specs=[
                    pl.BlockSpec((1, C, HW), lambda n: (n, 0, 0)),   # out
                    pl.BlockSpec((1, C, 1), lambda n: (n, 0, 0)),    # y
                ],
            ),
            compiler_params=pltpu.CompilerParams(
                dimension_semantics=("parallel",),
                vmem_limit_bytes=vmem_limit),
        )(x_flat, w1f, b1f.reshape(Cr, 1), w2f, b2f.reshape(C, 1))
        return out_flat.reshape(N, C, H, W), y3.reshape(N, C, 1, 1)

    # ---------------- two-phase path (large images) ----------------
    # Block budget: phase 2 holds in + out blocks double-buffered (4 blocks).
    block_budget = max(vmem_usable // 5, 1 << 20)

    # Channel tile: full C if affordable at the minimum lane width, else a
    # multiple of 8 (guards very large C and also gives an extra parallel
    # grid axis on v7x).
    if C * 128 * itemsize <= block_budget:
        c_tile = C
    else:
        c_tile = max(8, (block_budget // (128 * itemsize)) // 8 * 8)
    if _max_c_tile is not None and _max_c_tile < c_tile:
        c_tile = max(8, (_max_c_tile // 8) * 8) if _max_c_tile < C else C
    num_c = pl.cdiv(C, c_tile)

    # HW tile: multiple of 128 sized purely by bytes (no small-lane cap), or
    # the full HW extent if it fits (full-extent blocks are always legal).
    budget_lanes = max(128, (block_budget // (c_tile * itemsize)) // 128 * 128)
    if _max_hw_tile is not None:
        budget_lanes = max(128, (min(budget_lanes, _max_hw_tile) // 128) * 128)
    hw_tile = HW if budget_lanes >= HW else budget_lanes
    num_t = pl.cdiv(HW, hw_tile)
    needs_mask = (HW % hw_tile) != 0

    block_bytes = c_tile * hw_tile * itemsize
    vmem_p1 = _clamp(2 * block_bytes + (4 << 20), 16 << 20, vmem_usable)
    vmem_p2 = _clamp(4 * block_bytes + (4 << 20), 16 << 20, vmem_usable)

    # Phase 1: per-channel spatial sums (f32), no pad/slice, masked last tile.
    sums = pl.pallas_call(
        functools.partial(_pool_sum_kernel, hw_tile=hw_tile, hw_total=HW,
                          needs_mask=needs_mask),
        out_shape=jax.ShapeDtypeStruct((N, C, 1), jnp.float32),
        grid_spec=pltpu.PrefetchScalarGridSpec(
            num_scalar_prefetch=0,
            grid=(N, num_c, num_t),
            in_specs=[pl.BlockSpec((1, c_tile, hw_tile),
                                   lambda n, c, t: (n, c, t))],
            out_specs=pl.BlockSpec((1, c_tile, 1),
                                   lambda n, c, t: (n, c, 0)),
            scratch_shapes=[pltpu.VMEM((c_tile, 1), jnp.float32)],
        ),
        compiler_params=pltpu.CompilerParams(
            dimension_semantics=("parallel", "parallel", "arbitrary"),
            vmem_limit_bytes=vmem_p1),
    )(x_flat)

    # Tiny MLP + sigmoid for all N at once in plain JAX (lane-dense matmuls,
    # off the streaming kernels' critical path).
    pooled = sums[:, :, 0] * jnp.float32(1.0 / HW)               # (N, C) f32
    h = jnp.maximum(pooled @ w1f.T + b1f, 0.0)                   # (N, Cr)
    yv = jax.nn.sigmoid(h @ w2f.T + b2f)                         # (N, C)
    y3 = yv.astype(x.dtype).reshape(N, C, 1)

    # Phase 2: streaming scale, all grid axes parallel, masked boundary stores.
    out_flat = pl.pallas_call(
        _scale_kernel,
        out_shape=jax.ShapeDtypeStruct((N, C, HW), x.dtype),
        grid_spec=pltpu.PrefetchScalarGridSpec(
            num_scalar_prefetch=0,
            grid=(N, num_c, num_t),
            in_specs=[
                pl.BlockSpec((1, c_tile, hw_tile), lambda n, c, t: (n, c, t)),
                pl.BlockSpec((1, c_tile, 1), lambda n, c, t: (n, c, 0)),
            ],
            out_specs=pl.BlockSpec((1, c_tile, hw_tile),
                                   lambda n, c, t: (n, c, t)),
        ),
        compiler_params=pltpu.CompilerParams(
            dimension_semantics=("parallel", "parallel", "parallel"),
            vmem_limit_bytes=vmem_p2),
    )(x_flat, y3)

    return out_flat.reshape(N, C, H, W), y3.reshape(N, C, 1, 1)


# --------------------------------------------------------------------------
# Reference + test
# --------------------------------------------------------------------------
def _reference(x, w1, b1, w2, b2):
    pooled = jnp.mean(x.astype(jnp.float32), axis=(2, 3))        # (N, C)
    h = jnp.maximum(pooled @ w1.T + b1, 0.0)                     # (N, Cr)
    y = jax.nn.sigmoid(h @ w2.T + b2)                            # (N, C)
    y = y[:, :, None, None].astype(x.dtype)
    return x * y, y


def _make_inputs(key, N, C, H, W, Cr, dtype):
    kx, k1, k2, k3, k4 = jax.random.split(key, 5)
    x = jax.random.normal(kx, (N, C, H, W), dtype=dtype)
    # Conv2d(C, Cr, 1): weight (Cr, C, 1, 1) -> (Cr, C); bias (Cr,)
    w1 = jax.random.normal(k1, (Cr, C), dtype=jnp.float32) * 0.1
    b1 = jax.random.normal(k2, (Cr,), dtype=jnp.float32) * 0.1
    # Conv2d(Cr, C, 1): weight (C, Cr, 1, 1) -> (C, Cr); bias (C,)
    w2 = jax.random.normal(k3, (C, Cr), dtype=jnp.float32) * 0.1
    b2 = jax.random.normal(k4, (C,), dtype=jnp.float32) * 0.1
    return x, w1, b1, w2, b2


if __name__ == "__main__":
    key = jax.random.PRNGKey(0)
    C, reduction = 32, 16
    Cr = C // reduction

    # 1) Fused single-pass path (small, HW a multiple of 128).
    x, w1, b1, w2, b2 = _make_inputs(key, 2, C, 16, 16, Cr, jnp.float32)
    out, y = ca_layer(x, w1, b1, w2, b2)
    jax.block_until_ready((out, y))
    out_ref, y_ref = _reference(x, w1, b1, w2, b2)
    assert jnp.allclose(y, y_ref, atol=1e-5, rtol=1e-5), "fused y mismatch"
    assert jnp.allclose(out, out_ref, atol=1e-5, rtol=1e-5), "fused out mismatch"

    # 2) Two-phase path forced with small tiles, non-128-aligned HW (exercises
    #    the iota mask, C blocking and masked boundary stores).
    x2, w1b, b1b, w2b, b2b = _make_inputs(jax.random.PRNGKey(1), 2, C, 13, 13,
                                          Cr, jnp.float32)
    out2, y2 = ca_layer(x2, w1b, b1b, w2b, b2b, force_two_phase=True,
                        _max_hw_tile=128, _max_c_tile=16)
    jax.block_until_ready((out2, y2))
    out2_ref, y2_ref = _reference(x2, w1b, b1b, w2b, b2b)
    assert jnp.allclose(y2, y2_ref, atol=1e-5, rtol=1e-5), "2-phase y mismatch"
    assert jnp.allclose(out2, out2_ref, atol=1e-5, rtol=1e-5), "2-phase out mismatch"

    print("KERNEL_OK")
</pallas_src>

<mosaic_0001>
module attributes {stable_mosaic.version = 11 : i64} {
  func.func @_fused_kernel(%arg0: i32, %arg1: memref<1x32x256xf32, #tpu.memory_space<vmem>>, %arg2: memref<2x32xf32, #tpu.memory_space<vmem>>, %arg3: memref<2x1xf32, #tpu.memory_space<vmem>>, %arg4: memref<32x2xf32, #tpu.memory_space<vmem>>, %arg5: memref<32x1xf32, #tpu.memory_space<vmem>>, %arg6: memref<1x32x256xf32, #tpu.memory_space<vmem>>, %arg7: memref<1x32x1xf32, #tpu.memory_space<vmem>>) attributes {dimension_semantics = [#tpu.dimension_semantics<parallel>], iteration_bounds = array<i64: 2>, scalar_prefetch = 0 : i64, scratch_operands = 0 : i64, tpu.core_type = #tpu.core_type<tc>, window_params = [{transform_indices = @transform_0, window_bounds = array<i64: 1, 32, 256>}, {pipeline_mode = #tpu.pipeline_mode<synchronous>, transform_indices = @transform_1, window_bounds = array<i64: 2, 32>}, {pipeline_mode = #tpu.pipeline_mode<synchronous>, transform_indices = @transform_2, window_bounds = array<i64: 2, 1>}, {pipeline_mode = #tpu.pipeline_mode<synchronous>, transform_indices = @transform_3, window_bounds = array<i64: 32, 2>}, {pipeline_mode = #tpu.pipeline_mode<synchronous>, transform_indices = @transform_4, window_bounds = array<i64: 32, 1>}, {transform_indices = @transform_5, window_bounds = array<i64: 1, 32, 256>}, {transform_indices = @transform_6, window_bounds = array<i64: 1, 32, 1>}]} {
    %c0 = arith.constant 0 : index
    %c0_0 = arith.constant 0 : index
    %c0_1 = arith.constant 0 : index
    %0 = vector.load %arg1[%c0, %c0_0, %c0_1] : memref<1x32x256xf32, #tpu.memory_space<vmem>>, vector<1x32x256xf32>
    %1 = vector.shape_cast %0 : vector<1x32x256xf32> to vector<32x256xf32>
    %cst = arith.constant dense<0.000000e+00> : vector<32xf32>
    %2 = vector.multi_reduction <add>, %1, %cst [1] : vector<32x256xf32> to vector<32xf32>
    %3 = vector.shape_cast %2 : vector<32xf32> to vector<32x1xf32>
    %cst_2 = arith.constant 3.906250e-03 : f32
    %4 = vector.broadcast %cst_2 : f32 to vector<32x1xf32>
    %5 = arith.mulf %3, %4 : vector<32x1xf32>
    %c0_3 = arith.constant 0 : index
    %c0_4 = arith.constant 0 : index
    %6 = vector.load %arg2[%c0_3, %c0_4] : memref<2x32xf32, #tpu.memory_space<vmem>>, vector<2x32xf32>
    %cst_5 = arith.constant dense<0.000000e+00> : vector<2x1xf32>
    %7 = tpu.matmul %6, %5, %cst_5 {dimension_numbers = #tpu.dot_dimension_numbers<[1], [0], [0], [1], [0, 0, 1, 1], [], []>} : vector<2x32xf32>, vector<32x1xf32>, vector<2x1xf32> -> vector<2x1xf32>
    %c0_6 = arith.constant 0 : index
    %c0_7 = arith.constant 0 : index
    %8 = vector.load %arg3[%c0_6, %c0_7] : memref<2x1xf32, #tpu.memory_space<vmem>>, vector<2x1xf32>
    %9 = arith.addf %7, %8 : vector<2x1xf32>
    %cst_8 = arith.constant 0.000000e+00 : f32
    %10 = vector.broadcast %cst_8 : f32 to vector<2x1xf32>
    %11 = arith.maximumf %9, %10 : vector<2x1xf32>
    %c0_9 = arith.constant 0 : index
    %c0_10 = arith.constant 0 : index
    %12 = vector.load %arg4[%c0_9, %c0_10] : memref<32x2xf32, #tpu.memory_space<vmem>>, vector<32x2xf32>
    %cst_11 = arith.constant dense<0.000000e+00> : vector<32x1xf32>
    %13 = tpu.matmul %12, %11, %cst_11 {dimension_numbers = #tpu.dot_dimension_numbers<[1], [0], [0], [1], [0, 0, 1, 1], [], []>} : vector<32x2xf32>, vector<2x1xf32>, vector<32x1xf32> -> vector<32x1xf32>
    %c0_12 = arith.constant 0 : index
    %c0_13 = arith.constant 0 : index
    %14 = vector.load %arg5[%c0_12, %c0_13] : memref<32x1xf32, #tpu.memory_space<vmem>>, vector<32x1xf32>
    %15 = arith.addf %13, %14 : vector<32x1xf32>
    %16 = arith.negf %15 : vector<32x1xf32>
    %17 = math.exp %16 : vector<32x1xf32>
    %cst_14 = arith.constant 1.000000e+00 : f32
    %18 = vector.broadcast %cst_14 : f32 to vector<32x1xf32>
    %19 = arith.addf %18, %17 : vector<32x1xf32>
    %20 = arith.divf %18, %19 : vector<32x1xf32>
    %c0_15 = arith.constant 0 : index
    %c0_16 = arith.constant 0 : index
    %c0_17 = arith.constant 0 : index
    %21 = vector.load %arg7[%c0_15, %c0_16, %c0_17] : memref<1x32x1xf32, #tpu.memory_space<vmem>>, vector<1x32x1xf32>
    %22 = vector.shape_cast %21 : vector<1x32x1xf32> to vector<32x1xf32>
    %23 = vector.shape_cast %20 : vector<32x1xf32> to vector<1x32x1xf32>
    tpu.vector_store %arg7[%c0_15, %c0_16, %c0_17], %23 {strides = array<i32>} : memref<1x32x1xf32, #tpu.memory_space<vmem>>, vector<1x32x1xf32>,
    %24 = vector.broadcast %20 : vector<32x1xf32> to vector<32x256xf32>
    %25 = arith.mulf %1, %24 : vector<32x256xf32>
    %c0_18 = arith.constant 0 : index
    %c0_19 = arith.constant 0 : index
    %c0_20 = arith.constant 0 : index
    %26 = vector.load %arg6[%c0_18, %c0_19, %c0_20] : memref<1x32x256xf32, #tpu.memory_space<vmem>>, vector<1x32x256xf32>
    %27 = vector.shape_cast %26 : vector<1x32x256xf32> to vector<32x256xf32>
    %28 = vector.shape_cast %25 : vector<32x256xf32> to vector<1x32x256xf32>
    tpu.vector_store %arg6[%c0_18, %c0_19, %c0_20], %28 {strides = array<i32>} : memref<1x32x256xf32, #tpu.memory_space<vmem>>, vector<1x32x256xf32>,
    return
  }
  func.func @transform_0(%arg0: i32) -> (i32, i32, i32) {
    %c0_i32 = arith.constant 0 : i32
    %c0_i32_0 = arith.constant 0 : i32
    %c0_i32_1 = arith.constant 0 : i32
    return %arg0, %c0_i32, %c0_i32_0 : i32, i32, i32
  }
  func.func @transform_1(%arg0: i32) -> (i32, i32) {
    %c0_i32 = arith.constant 0 : i32
    %c0_i32_0 = arith.constant 0 : i32
    %c0_i32_1 = arith.constant 0 : i32
    return %c0_i32, %c0_i32_0 : i32, i32
  }
  func.func @transform_2(%arg0: i32) -> (i32, i32) {
    %c0_i32 = arith.constant 0 : i32
    %c0_i32_0 = arith.constant 0 : i32
    %c0_i32_1 = arith.constant 0 : i32
    return %c0_i32, %c0_i32_0 : i32, i32
  }
  func.func @transform_3(%arg0: i32) -> (i32, i32) {
    %c0_i32 = arith.constant 0 : i32
    %c0_i32_0 = arith.constant 0 : i32
    %c0_i32_1 = arith.constant 0 : i32
    return %c0_i32, %c0_i32_0 : i32, i32
  }
  func.func @transform_4(%arg0: i32) -> (i32, i32) {
    %c0_i32 = arith.constant 0 : i32
    %c0_i32_0 = arith.constant 0 : i32
    %c0_i32_1 = arith.constant 0 : i32
    return %c0_i32, %c0_i32_0 : i32, i32
  }
  func.func @transform_5(%arg0: i32) -> (i32, i32, i32) {
    %c0_i32 = arith.constant 0 : i32
    %c0_i32_0 = arith.constant 0 : i32
    %c0_i32_1 = arith.constant 0 : i32
    return %arg0, %c0_i32, %c0_i32_0 : i32, i32, i32
  }
  func.func @transform_6(%arg0: i32) -> (i32, i32, i32) {
    %c0_i32 = arith.constant 0 : i32
    %c0_i32_0 = arith.constant 0 : i32
    %c0_i32_1 = arith.constant 0 : i32
    return %arg0, %c0_i32, %c0_i32_0 : i32, i32, i32
  }
}

</mosaic_0001>

<bundles_post_ra>
// kernel: tpu_custom_call.1
= control target key start
LH: loop header
LB: loop body
LE: loop exit
PB: predicated region body
PF: predicated region fallthrough
CT: control target
= control target key end

     0   :  { %12 = vsyncpa [#allocation3], 0  ;;  %s1191_s0 = inlined_call_operand.hbm [shape: f32[2,32,256], index: 0, kind: input, shape index: {}]   ;;  %s1192_s1 = inlined_call_operand.vmem [shape: f32[2,32], index: 1, kind: input, shape index: {}]   ;;  %s1193_s2 = inlined_call_operand.vmem [shape: f32[2,1], index: 2, kind: input, shape index: {}]   ;;  %s1194_s3 = inlined_call_operand.vmem [shape: f32[32,2], index: 3, kind: input, shape index: {}]   ;;  %s1195_s4 = inlined_call_operand.vmem [shape: f32[32,1], index: 4, kind: input, shape index: {}]   ;;  %s1196_s5 = inlined_call_operand.hbm [shape: f32[2,32,256], index: 5, kind: output, shape index: {0}]   ;;  %s1197_s6 = inlined_call_operand.vmem [shape: f32[2,32,1], index: 6, kind: output, shape index: {1}]  }
   0x1   :  { %14 = vsyncpa [#allocation3 + $0x1], 0 }
   0x2   :  { %15 = vsyncpa [#allocation4], 0 }
   0x3   :  { %17 = vsyncpa [#allocation4 + $0x1], 0  ;;  %s958_s21 = smov 0   ;;  %s960_s22 = smov 0  }
   0x4   :  { %s962_s23 = smov 0   ;;  %s964_s24 = smov 0  }
   0x5 LB: > { %s979_s25 = sadd.s32 4294967295, %s911_s24   ;;  %s679_s26 = sadd.s32 4294967294, %s911_s24   ;;  %s911_s24 = sphi %s964_s24, %s1210_s24   ;;  %s907_s23 = sphi %s962_s23, %s1209_s23   ;;  %s903_s22 = sphi %s960_s22, %s1208_s22   ;;  %s899_s21 = sphi %s958_s21, %s1207_s21  }
   0x6   : > { %s983_s27 = sadd.s32 1, %s911_s24   ;;  %s30_s28 = sadd.s32 1, %s907_s23 }
   0x7   : > { %s27_s29 = ssub.s32 %s911_s24, %s983_s27  ;;  %p37_p0 = scmp.ne.s32.totalorder %s907_s23, %s903_s22 }
   0x8   : > { %p28_p1 = scmp.eq.s32.totalorder %s27_s29, 0  ;;  %p38_p2 = scmp.eq.s32.totalorder %s911_s24, 0 }
   0x9   : > { %p43_p3 = scmp.ne.s32.totalorder %s903_s22, %s899_s21  ;;  %p44_p4 = scmp.eq.s32.totalorder %s979_s25, 0 }
   0xa   : > { %s995_s30 = scalar_select %p28_p1, %s907_s23, %s30_s28  }
   0xb   : > { %p997_p5 = por %p38_p2, %p37_p0  ;;  %p1001_p6 = por %p44_p4, %p43_p3 }
   0xc   : > { %p151_p7 = scmp.eq.s32.totalorder %s979_s25, 1  ;;  %p157_p8 = scmp.eq.s32.totalorder %s679_s26, 1 }
   0xd   : > { %p755_p10 = scmp.lt.s32.totalorder %s911_s24, 2  ;;  %s215_s11 = sand.u32 1, %s907_s23  }
   0xe   : > { %p1008_p11 = por %p151_p7, %p37_p0  ;;  %p1012_p12 = por %p157_p8, %p43_p3 }
   0xf   : > { %s705_s12 = sshll.u32 %s911_s24, 10  ;;  %s682_s13 = sshll.u32 %s215_s11, 6 }
  0x10   : > { %s1201_s9 = scalar_select %p1008_p11, 1, 0 }
  0x11   : > { %s1202_s10 = scalar_select %p1012_p12, 1, 0 }
  0x12   : > { %s1021_s16 = scalar_lea.hbm %s1191_s0, %s705_s12  ;;  %s219_s17 = scalar_lea.vmem [#allocation2], %s682_s13 }
  0x13   : > { %s226_s18 = sshll.u32 %s219_s17, 4  ;;  %p1025_p13 = pnand %p755_p10, %p997_p5  ;;  %s1029_s18 = int_to_ptr.vmem [resolvable:$true] %s226_s18 }
  0x14   : > { %s1031_s20 = scalar_lea.sflag [#allocation3], %s215_s11  ;;  %s815_s26 = scalar_lea.hbm %s1021_s16, 1024 }
  0x15   : > { %p816_p0 = scmp.ne.s32.totalorder %s1021_s16, %s815_s26  ;;  %p817_p1 = pneg %p1025_p13 }
  0x16   : > { %s820_s7 = scalar_lea.hbm %s1191_s0, 2048  ;;  %p821_p4 = scmp.lt.u32.totalorder %s1021_s16, %s1191_s0 }
  0x17   : > { %p818_p2 = pnand %p817_p1, %p816_p0  ;;  %p822_p5 = scmp.lt.u32.totalorder %s820_s7, %s815_s26 }
  0x18   : > { %p824_p8 = scmp.lt.u32.totalorder %s815_s26, %s1021_s16 }
  0x19   : > { %p819_p3 = pneg %p818_p2  ;;  %p823_p7 = por %p822_p5, %p821_p4 }
  0x1b   : > { %p825_p10 = por %p824_p8, %p823_p7 }
  0x1d   : > { %p826_p9 = pnand %p825_p10, %p819_p3 }
  0x1f   : > { %829 = shalt.err (!%p826_p9)
}
  0x20   : > { %s830_s11 = scalar_lea.vmem %s1029_s18, 1024  ;;  %s913_s14 = smov [#allocation2]  }
  0x21   : > { %p831_p0 = scmp.ne.s32.totalorder %s1029_s18, %s830_s11  ;;  %s835_s15 = sshll.u32 %s913_s14, 4  ;;  %s836_s15 = int_to_ptr.vmem [resolvable:$false] %s835_s15 }
  0x22   : > { %s837_s17 = scalar_lea.vmem %s836_s15, 2048  ;;  %p838_p11 = scmp.lt.s32.totalorder %s1029_s18, %s836_s15 }
  0x23   : > { %p833_p2 = pnand %p831_p0, %p817_p1  ;;  %p839_p4 = scmp.lt.s32.totalorder %s837_s17, %s830_s11 }
  0x25   : > { %p834_p12 = pneg %p833_p2  ;;  %p840_p5 = por %p839_p4, %p838_p11 }
  0x27   : > { %p841_p7 = pnand %p840_p5, %p834_p12 }
  0x29   : > { %844 = shalt.err (!%p841_p7)
}
  0x2a   : > { %s914_s26 = smov 256   ;;  %s915_s28 = smov 16  }
  0x2b   : > { %750 = dma.hbm_to_vmem [thread:$0]  (!%p1025_p13), %s1021_s16, 1024, %s1029_s18, %s1031_s20, %s914_s26, %s914_s26, %s915_s28  }
  0x2c   : > { %p685_p9 = scmp.ge.s32.totalorder %s911_s24, 1  ;;  %p234_p1 = scmp.lt.s32.totalorder %s911_s24, 3 }
  0x2e   : > { %p235_p3 = pnand %p685_p9, %p234_p1 }
  0x2f   : > { %s1062_s29 = sand.u32 (!%p235_p3), 1, %s903_s22  }
  0x30   : > { %238 = sbr.rel (%p235_p3) target bundleno = 829 (0x33d), region = 40  ;;  %s686_s7 = sshll.u32 (!%p235_p3), %s1062_s29, 6 }
  0x31   : > { %s241_s12 = scalar_lea.sflag (!%p235_p3), [#allocation3], %s1062_s29  ;;  %s244_s13 = scalar_lea.vmem (!%p235_p3), [#allocation2], %s686_s7 }
  0x37   : > { %890 = dma.done.wait (%p1001_p6), %s241_s12, 1024  }
  0x38   : > { %892 = vsyncadd (%p1001_p6), %s241_s12, 4294966272  ;;  %v1072_v0 = vld [vmem:[%s244_s13 + $0x20] sm:$0xff]  ;;  %v1074_v1 = vld [vmem:[%s244_s13 + $0x28] sm:$0xff]  ;;  %v916_v12 = vmov 0.0|0.0   ;;  %vm917_vm0 = vmmov 0   ;;  %v918_v13 = vmov 0.0  }
  0x39   : > { %v1076_v2 = vld [vmem:[%s244_s13] sm:$0xff]  ;;  %v297_v3 = vadd.f32 %v1074_v1, %v1072_v0  ;;  %v1080_v4 = vld [vmem:[%s244_s13 + $0x8] sm:$0xff]  ;;  %v1082_v5 = vld [vmem:[%s244_s13 + $0x30] sm:$0xff]  ;;  %737 = vmatprep.subr.bf16.mxu0 %v916_v12  ;;  %726 = vmatprep.mubr.msk.f32.mxu0 %vm917_vm0, %v918_v13  ;;  %vm309_vm1 = vcmask 261120   ;;  %vm392_vm2 = vcmask 15360   ;;  %vm405_vm3 = vcmask 1041408  }
  0x3a   : > { %v1084_v6 = vld [vmem:[%s244_s13 + $0x38] sm:$0xff]  ;;  %v291_v7 = vadd.f32 %v1080_v4, %v1076_v2  ;;  %v1088_v8 = vld [vmem:[%s244_s13 + $0x10] sm:$0xff]  ;;  %v307_v24 = vld [vmem:[%s1192_s1] sm:$0x3]  ;;  %v919_v34 = vmov 0   ;;  %p278_p6 = scmp.lt.s32.totalorder %s979_s25, 1 }
  0x3b   : > { %v1090_v9 = vld [vmem:[%s244_s13 + $0x18] sm:$0xff]  ;;  %298 = vadd.xlane.f32.xlu1 %v297_v3  ;;  %v300_v10 = vadd.f32 %v1084_v6, %v1082_v5  ;;  %v384_v25 = vld [vmem:[%s1194_s3] sm:$0xff]  ;;  %v385_v31 = vld [vmem:[%s1194_s3 + $0x8] sm:$0xff]  ;;  %797 = vset.pattern.permute.xlu0 %v919_v34  ;;  %vm518_vm4 = vcmask 7168   ;;  %s270_s13 = scalar_lea.vmem [#allocation5], %s686_s7  ;;  %s707_s16 = sshll.u32 %s979_s25, 10 }
  0x3c   : > { %292 = vadd.xlane.f32.xlu0 %v291_v7  ;;  %v294_v11 = vadd.f32 %v1090_v9, %v1088_v8  ;;  %731 = vmatprep.mubr.msk.f32.mxu1 %vm392_vm2, %v384_v25  ;;  %v308_v26 = vld [vmem:[%s1193_s2] sm:$0x3]  ;;  %v386_v32 = vld [vmem:[%s1194_s3 + $0x10] sm:$0xff]  ;;  %v387_v33 = vld [vmem:[%s1194_s3 + $0x18] sm:$0xff]  ;;  %s279_s15 = scalar_select %p278_p6, %s979_s25, 1 }
  0x3d   : > { %798 = vset.pattern.permute.xlu1 %v919_v34  ;;  %v389_v35 = vld [vmem:[%s1195_s4 + $0x8] sm:$0xff]  ;;  %v388_v36 = vld [vmem:[%s1195_s4] sm:$0xff]  ;;  %v391_v41 = vld [vmem:[%s1195_s4 + $0x18] sm:$0xff]  ;;  %s578_s8 = sshll.u32 %s270_s13, 4  ;;  %s1145_s19 = scalar_lea.hbm %s1196_s5, %s707_s16  ;;  %s1140_s8 = int_to_ptr.vmem [resolvable:$true] %s578_s8 }
  0x3e   : > { %v390_v43 = vld [vmem:[%s1195_s4 + $0x10] sm:$0xff]  ;;  %s706_s17 = sshll.u32 %s279_s15, 5  ;;  %s560_s25 = scalar_lea.sflag [#allocation4], %s1062_s29 }
  0x3f   : > { %301 = vadd.xlane.f32.xlu1 %v300_v10  ;;  %s282_s12 = scalar_lea.vmem %s1197_s6, %s706_s17  ;;  %s845_s20 = scalar_lea.vmem %s1140_s8, 1024 }
  0x40   : > { %295 = vadd.xlane.f32.xlu0 %v294_v11  ;;  %p846_p11 = scmp.ne.s32.totalorder %s1140_s8, %s845_s20  ;;  %p1204_p12 = scmp.ne.s32.totalorder %s1201_s9, 0 }
  0x41   : > { %s920_s11 = smov [#allocation5]  }
  0x42   : > { %p847_p13 = pnand %p846_p11, %p1204_p12  ;;  %s849_s14 = sshll.u32 %s920_s11, 4  ;;  %s850_s14 = int_to_ptr.vmem [resolvable:$false] %s849_s14 }
  0x43   : > { %s851_s15 = scalar_lea.vmem %s850_s14, 2048  ;;  %p852_p10 = scmp.lt.s32.totalorder %s1140_s8, %s850_s14 }
  0x44   : > { %p848_p8 = pneg %p847_p13  ;;  %p853_p0 = scmp.lt.s32.totalorder %s851_s15, %s845_s20 }
  0x46   : > { %p854_p2 = por %p853_p0, %p852_p10 }
  0x48   : > { %p855_p4 = pnand %p854_p2, %p848_p8 }
  0xc8   : > { %v299_v14 = vpop.xlane.xlu1 %298 }
  0xc9   : > { %v293_v15 = vpop.xlane.xlu0 %292  ;;  %v305_v20 = vmul.f32 0.00390625, %v299_v14 }
  0xca   : > { %v303_v18 = vmul.f32 0.00390625, %v293_v15 }
  0xcc   : > { %v302_v16 = vpop.xlane.xlu1 %301 }
  0xcd   : > { %v296_v17 = vpop.xlane.xlu0 %295  ;;  %v306_v21 = vmul.f32 0.00390625, %v302_v16 }
  0xce   : > { %v304_v19 = vmul.f32 0.00390625, %v296_v17 }
  0xcf   : > { %v741_v23 = vpack.c.bf16 %v306_v21, %v305_v20 }
  0xd0   : > { %v738_v22 = vpack.c.bf16 %v304_v19, %v303_v18 }
  0xd2   : > { %739 = vmatpush3.bf16.msra.mxu0 %v738_v22 }
  0xd3   : > { %740 = vmatprep.subr.bf16.mxu0 %v916_v12 }
  0xd6   : > { %742 = vmatpush3.bf16.msra.mxu0 %v741_v23 }
  0xd9   : > { %727 = vmatmul.mubr.msk.f32.vlgmr.msra.gmra.mrb[0].mxu0 %vm309_vm1, %v307_v24 }
 0x1ac   : > { %v379_v27 = vpop.f32.mrb[0].mxu0 }
 0x1ad   : > { %v380_v28 = vadd.f32 %v379_v27, %v308_v26  ;;  %v728_v29 = vpop.f32.mrb[1].mxu0 }
 0x1af   : > { %v383_v30 = vmax.f32 %v380_v28, 0.0 }
 0x1b1   : > { %729 = vmatprep.subr.msk.mxu1 %vm405_vm3, %v383_v30 }
 0x1b2   : > { %730 = vmatpush3.msk.msra.mxu1 %vm405_vm3, %v383_v30 }
 0x1b3   : > { %732 = vmatmul.mubr.msk.f32.vlgmr.msra.gmra.mrb[0].mxu1 %vm392_vm2, %v385_v31 }
 0x1b4   : > { %734 = vmatprep.mubr.msk.f32.mxu1 %vm392_vm2, %v386_v32 }
 0x1b7   : > { %735 = vmatmul.mubr.msk.f32.gmra.mrb[2].mxu1 %vm392_vm2, %v387_v33 }
 0x286   : > { %v733_v37 = vpop.f32.mrb[0].mxu1 }
 0x287   : > { %v481_v38 = vadd.f32 %v733_v37, %v389_v35  ;;  %v475_v39 = vpop.f32.mrb[1].mxu1 }
 0x288   : > { %v476_v40 = vadd.f32 %v475_v39, %v388_v36 }
 0x289   : > { %v697_v42 = vmul.f32 -1.442695, %v481_v38 }
 0x28a   : > { %v696_v44 = vmul.f32 -1.442695, %v476_v40  ;;  %v736_v45 = vpop.f32.mrb[2].mxu1 }
 0x28b   : > { %799 = vpow2.f32 %v697_v42  ;;  %v491_v46 = vadd.f32 %v736_v45, %v391_v41  ;;  %v485_v47 = vpop.f32.mrb[3].mxu1 }
 0x28c   : > { %801 = vpow2.f32 %v696_v44  ;;  %v486_v48 = vadd.f32 %v485_v47, %v390_v43 }
 0x28d   : > { %v699_v49 = vmul.f32 -1.442695, %v491_v46 }
 0x28e   : > { %v698_v50 = vmul.f32 -1.442695, %v486_v48 }
 0x28f   : > { %803 = vpow2.f32 %v699_v49 }
 0x290   : > { %805 = vpow2.f32 %v698_v50 }
 0x295   : > { %v800_v51 = vpop.eup %799 }
 0x296   : > { %v802_v52 = vpop.eup %801  ;;  %v507_v53 = vadd.f32 1.0, %v800_v51 }
 0x297   : > { %v506_v54 = vadd.f32 1.0, %v802_v52 }
 0x298   : > { %807 = vrcp.f32 %v507_v53 }
 0x299   : > { %v804_v55 = vpop.eup %803  ;;  %809 = vrcp.f32 %v506_v54 }
 0x29a   : > { %v806_v56 = vpop.eup %805  ;;  %v509_v57 = vadd.f32 1.0, %v804_v55 }
 0x29b   : > { %v508_v58 = vadd.f32 1.0, %v806_v56 }
 0x29c   : > { %811 = vrcp.f32 %v509_v57 }
 0x29d   : > { %813 = vrcp.f32 %v508_v58 }
 0x2a2   : > { %v808_v59 = vpop.eup %807 }
 0x2a3   : > { %v810_v60 = vpop.eup %809  ;;  %520 = vst.msk [vmem:[%s282_s12 + $0x8] sm:$0xff] %vm518_vm4, %v808_v59  ;;  %530 = vperm.xlu1 %798, %v808_v59  }
 0x2a4   : > { %519 = vst.msk [vmem:[%s282_s12] sm:$0xff] %vm518_vm4, %v810_v60  ;;  %525 = vperm.xlu0 %797, %v810_v60  }
 0x2a6   : > { %v812_v61 = vpop.eup %811 }
 0x2a7   : > { %v814_v62 = vpop.eup %813  ;;  %522 = vst.msk [vmem:[%s282_s12 + $0x18] sm:$0xff] %vm518_vm4, %v812_v61 }
 0x2a8   : > { %521 = vst.msk [vmem:[%s282_s12 + $0x10] sm:$0xff] %vm518_vm4, %v814_v62  ;;  %535 = vperm.xlu1 %798, %v814_v62  }
 0x2ac   : > { %540 = vperm.xlu1 %798, %v812_v61  }
 0x322   : > { %v531_v63 = vpop.permute.xlu1 %530 }
 0x323   : > { %v545_v3 = vmul.f32 %v531_v63, %v1088_v8  ;;  %v546_v7 = vmul.f32 %v531_v63, %v1090_v9  ;;  %v526_v10 = vpop.permute.xlu0 %525 }
 0x324   : > { %v543_v11 = vmul.f32 %v526_v10, %v1076_v2  ;;  %v544_v12 = vmul.f32 %v526_v10, %v1080_v4 }
 0x325   : > { %553 = vst [vmem:[%s270_s13 + $0x10] sm:$0xff] %v545_v3  ;;  %554 = vst [vmem:[%s270_s13 + $0x18] sm:$0xff] %v546_v7 }
 0x326   : > { %551 = vst [vmem:[%s270_s13] sm:$0xff] %v543_v11  ;;  %552 = vst [vmem:[%s270_s13 + $0x8] sm:$0xff] %v544_v12 }
 0x327   : > { %v536_v13 = vpop.permute.xlu1 %535 }
 0x328   : > { %v547_v14 = vmul.f32 %v536_v13, %v1072_v0  ;;  %v548_v8 = vmul.f32 %v536_v13, %v1074_v1 }
 0x32a   : > { %555 = vst [vmem:[%s270_s13 + $0x20] sm:$0xff] %v547_v14  ;;  %556 = vst [vmem:[%s270_s13 + $0x28] sm:$0xff] %v548_v8 }
 0x32b   : > { %v541_v2 = vpop.permute.xlu1 %540 }
 0x32c   : > { %v549_v4 = vmul.f32 %v541_v2, %v1082_v5  ;;  %v550_v0 = vmul.f32 %v541_v2, %v1084_v6 }
 0x32e   : > { %557 = vst [vmem:[%s270_s13 + $0x30] sm:$0xff] %v549_v4  ;;  %558 = vst [vmem:[%s270_s13 + $0x38] sm:$0xff] %v550_v0 }
 0x32f   : > { %858 = shalt.err (!%p855_p4)
}
 0x330   : > { %s859_s17 = scalar_lea.hbm %s1145_s19, 1024  ;;  %s863_s12 = scalar_lea.hbm %s1196_s5, 2048 }
 0x331   : > { %p860_p5 = scmp.ne.s32.totalorder %s1145_s19, %s859_s17  ;;  %p864_p1 = scmp.lt.u32.totalorder %s1145_s19, %s1196_s5 }
 0x332   : > { %p865_p3 = scmp.lt.u32.totalorder %s863_s12, %s859_s17  ;;  %p867_p11 = scmp.lt.u32.totalorder %s859_s17, %s1145_s19 }
 0x333   : > { %p861_p7 = pnand %p860_p5, %p1204_p12 }
 0x334   : > { %p866_p6 = por %p865_p3, %p864_p1 }
 0x335   : > { %p862_p9 = pneg %p861_p7 }
 0x336   : > { %p868_p13 = por %p867_p11, %p866_p6 }
 0x338   : > { %p869_p8 = pnand %p868_p13, %p862_p9 }
 0x33a   : > { %872 = shalt.err (!%p869_p8)
}
 0x33b   : > { %s921_s7 = smov 256   ;;  %s922_s18 = smov 16  }
 0x33c   : > { %745 = dma.vmem_to_hbm [thread:$0]  (%p1204_p12), %s1140_s8, 1024, %s1145_s19, %s560_s25, %s921_s7, %s921_s7, %s922_s18  }
 0x33d PF: > { %s596_s20 = sand.u32 1, %s899_s21   ;;  %p1205_p10 = scmp.ne.s32.totalorder %s1202_s10, 0 }
 0x33e   : > { %p1206_p0 = scmp.ge.s32.totalorder %s911_s24, 2  ;;  %s597_s11 = scalar_lea.sflag [#allocation4], %s596_s20 }
 0x340   : > { %p752_p2 = pnand %p1206_p0, %p1205_p10 }
 0x342   : > { %894 = dma.done.wait (!%p752_p2), %s597_s11, 1024  }
 0x343   : > { %896 = vsyncadd (!%p752_p2), %s597_s11, 4294966272  ;;  %p20_p4 = scmp.ge.s32.totalorder %s983_s27, 4   ;;  %s1207_s21 = smov %s903_s22 }
 0x344   : > { %s1208_s22 = smov %s907_s23  ;;  %s1209_s23 = smov %s995_s30 }
 0x345   : > { %s1210_s24 = smov %s983_s27  ;;  %22 = sbr.rel (!%p20_p4) target bundleno = 5 (0x5), region = 97 }
 0x34c   :  { %610 = vsyncpa [#allocation3], 1 }
 0x34d   :  { %612 = vsyncpa [#allocation3 + $0x1], 1 }
 0x34e   :  { %613 = vsyncpa [#allocation4], 1 }
 0x34f   :  { %615 = vsyncpa [#allocation4 + $0x1], 1 }

</bundles_post_ra>
